<compile_context>
chip_gen: v6e
topology: v6e:2x2x1
jax: 0.10.0
libtpu: 0.0.40
codegen_flags: <defaults>
</compile_context>

<pallas_src>
import functools

import jax
import jax.numpy as jnp
from jax.experimental import pallas as pl
from jax.experimental.pallas import tpu as pltpu


def _softplus(x):
    # Numerically stable softplus: log1p(exp(x)) == max(x, 0) + log1p(exp(-|x|)).
    return jnp.maximum(x, 0.0) + jnp.log1p(jnp.exp(-jnp.abs(x)))


def _bayesian_linear_kernel(x_ref, wm_ref, wr_ref, we_ref, bm_ref, br_ref, be_ref,
                            o_ref, acc_ref, *, compute_dtype):
    k = pl.program_id(2)

    @pl.when(k == 0)
    def _init():
        acc_ref[...] = jnp.zeros_like(acc_ref)

    # Reparameterized weight sample for this [TK, TN] tile; weights are stored
    # [IN, OUT] so the MXU consumes them directly (no in-kernel transpose).
    # NOTE: with >1 batch block this (identical) sample is recomputed per batch
    # block; negligible vs. the MXU work once TM >= 128.
    w = wm_ref[...] + _softplus(wr_ref[...]) * we_ref[...]

    x = x_ref[...]
    if compute_dtype is not None:
        # bf16 MXU operands, f32 accumulation (reparam math stays in f32).
        x = x.astype(compute_dtype)
        w = w.astype(compute_dtype)

    acc_ref[...] += jnp.dot(x, w, preferred_element_type=jnp.float32)

    @pl.when(k == pl.num_programs(2) - 1)
    def _finalize():
        b = bm_ref[...] + _softplus(br_ref[...]) * be_ref[...]     # [1, TN], f32
        o_ref[...] = (acc_ref[...] + b).astype(o_ref.dtype)


def bayesian_linear(x, weight_mean, weight_rho, eps_w, bias_mean, bias_rho, eps_b,
                    *, tm=None, tn=128, tk=128, compute_dtype=None):
    """Forward pass of BayesianLinear.

    x:                  [B, IN]
    weight_* / eps_w:   [OUT, IN]   (PyTorch module layout)
    bias_*   / eps_b:   [OUT]
    returns:            [B, OUT]
    """
    batch, in_features = x.shape
    out_features = weight_mean.shape[0]

    # Layout plumbing OUTSIDE the kernel: weights as [IN, OUT] (feeds the MXU without
    # an XLU transpose, OUT becomes the lane axis), biases as 2-D [1, OUT].
    wm_t = weight_mean.T
    wr_t = weight_rho.T
    we_t = eps_w.T
    bm2 = bias_mean.reshape(1, out_features)
    br2 = bias_rho.reshape(1, out_features)
    be2 = eps_b.reshape(1, out_features)

    if tm is None:
        tm = batch if batch <= 128 else 128
    tn = min(tn, out_features)
    tk = min(tk, in_features)
    if batch % tm or out_features % tn or in_features % tk:
        raise ValueError(
            f"({batch},{in_features})x({in_features},{out_features}) not divisible "
            f"by tiles (tm={tm}, tk={tk}, tn={tn})")

    grid = (batch // tm, out_features // tn, in_features // tk)
    m_blocks, n_blocks, _ = grid

    x_spec = pl.BlockSpec((tm, tk), lambda i, j, k: (i, k))
    w_spec = pl.BlockSpec((tk, tn), lambda i, j, k: (k, j))
    b_spec = pl.BlockSpec((1, tn), lambda i, j, k: (0, j))
    o_spec = pl.BlockSpec((tm, tn), lambda i, j, k: (i, j))

    cost = pl.CostEstimate(
        flops=2 * batch * in_features * out_features
              + 3 * in_features * out_features * m_blocks,
        transcendentals=2 * in_features * out_features * m_blocks
                        + 2 * out_features * m_blocks * n_blocks,
        bytes_accessed=4 * (batch * in_features
                            + 3 * in_features * out_features * m_blocks
                            + batch * out_features
                            + 3 * out_features),
    )

    kernel = functools.partial(_bayesian_linear_kernel, compute_dtype=compute_dtype)

    return pl.pallas_call(
        kernel,
        out_shape=jax.ShapeDtypeStruct((batch, out_features), x.dtype),
        grid_spec=pltpu.PrefetchScalarGridSpec(
            num_scalar_prefetch=0,
            grid=grid,
            in_specs=[x_spec, w_spec, w_spec, w_spec, b_spec, b_spec, b_spec],
            out_specs=o_spec,
            scratch_shapes=[pltpu.VMEM((tm, tn), jnp.float32)],
        ),
        compiler_params=pltpu.CompilerParams(
            dimension_semantics=("parallel", "parallel", "arbitrary")),
        cost_estimate=cost,
    )(x, wm_t, wr_t, we_t, bm2, br2, be2)


def reference(x, weight_mean, weight_rho, eps_w, bias_mean, bias_rho, eps_b,
              compute_dtype=None):
    w = weight_mean + jax.nn.softplus(weight_rho) * eps_w           # [OUT, IN]
    b = bias_mean + jax.nn.softplus(bias_rho) * eps_b               # [OUT]
    wt = w.T                                                        # [IN, OUT]
    if compute_dtype is not None:
        y = jnp.dot(x.astype(compute_dtype), wt.astype(compute_dtype),
                    preferred_element_type=jnp.float32)
    else:
        y = jnp.dot(x, wt, preferred_element_type=jnp.float32,
                    precision=jax.lax.Precision.HIGHEST)
    return y + b


if __name__ == "__main__":
    # Small but lane/sublane-friendly shapes (OUT, IN multiples of 128; batch mult of 8).
    in_features, out_features = 256, 256
    batch = 16
    mu_init = (-0.2, 0.2)
    rho_init = (-5.0, -4.0)

    key = jax.random.PRNGKey(0)
    keys = jax.random.split(key, 7)

    def uniform(k, shape, lo, hi):
        return jax.random.uniform(k, shape, jnp.float32, lo, hi)

    # Deterministic parameter init (stands in for nn.Parameter(...).uniform_(*init)).
    weight_mean = uniform(keys[0], (out_features, in_features), *mu_init)
    weight_rho = uniform(keys[1], (out_features, in_features), *rho_init)
    bias_mean = uniform(keys[2], (out_features,), *mu_init)
    bias_rho = uniform(keys[3], (out_features,), *rho_init)

    # Deterministic N(0,1) epsilon draws (the .sample() calls in forward).
    eps_w = jax.random.normal(keys[4], (out_features, in_features), jnp.float32)
    eps_b = jax.random.normal(keys[5], (out_features,), jnp.float32)

    x = jax.random.normal(keys[6], (batch, in_features), jnp.float32)

    args = (x, weight_mean, weight_rho, eps_w, bias_mean, bias_rho, eps_b)

    # f32 path.
    y = jax.block_until_ready(bayesian_linear(*args))
    y_ref = reference(*args)
    assert y.shape == (batch, out_features)
    assert jnp.allclose(y, y_ref, atol=5e-4, rtol=5e-4), "f32 mismatch vs reference"

    # bf16-operand / f32-accumulate path (v6e / v7x MXU-friendly).
    y_bf = jax.block_until_ready(bayesian_linear(*args, compute_dtype=jnp.bfloat16))
    y_bf_ref = reference(*args, compute_dtype=jnp.bfloat16)
    assert jnp.allclose(y_bf, y_bf_ref, atol=2e-3, rtol=2e-3), "bf16 mismatch vs reference"

    print("KERNEL_OK")
</pallas_src>

<mosaic_0001>
module attributes {stable_mosaic.version = 11 : i64} {
  func.func @_bayesian_linear_kernel(%arg0: i32, %arg1: i32, %arg2: i32, %arg3: memref<16x128xf32, #tpu.memory_space<vmem>>, %arg4: memref<128x128xf32, #tpu.memory_space<vmem>>, %arg5: memref<128x128xf32, #tpu.memory_space<vmem>>, %arg6: memref<128x128xf32, #tpu.memory_space<vmem>>, %arg7: memref<1x128xf32, #tpu.memory_space<vmem>>, %arg8: memref<1x128xf32, #tpu.memory_space<vmem>>, %arg9: memref<1x128xf32, #tpu.memory_space<vmem>>, %arg10: memref<16x128xf32, #tpu.memory_space<vmem>>, %arg11: memref<16x128xf32, #tpu.memory_space<vmem>>) attributes {dimension_semantics = [#tpu.dimension_semantics<parallel>, #tpu.dimension_semantics<parallel>, #tpu.dimension_semantics<arbitrary>], iteration_bounds = array<i64: 1, 2, 2>, scalar_prefetch = 0 : i64, scratch_operands = 1 : i64, tpu.core_type = #tpu.core_type<tc>, window_params = [{transform_indices = @transform_0, window_bounds = array<i64: 16, 128>}, {transform_indices = @transform_1, window_bounds = array<i64: 128, 128>}, {transform_indices = @transform_2, window_bounds = array<i64: 128, 128>}, {transform_indices = @transform_3, window_bounds = array<i64: 128, 128>}, {transform_indices = @transform_4, window_bounds = array<i64: 1, 128>}, {transform_indices = @transform_5, window_bounds = array<i64: 1, 128>}, {transform_indices = @transform_6, window_bounds = array<i64: 1, 128>}, {transform_indices = @transform_7, window_bounds = array<i64: 16, 128>}]} {
    %c0_i32 = arith.constant 0 : i32
    %0 = arith.cmpi eq, %arg2, %c0_i32 : i32
    %1 = arith.extui %0 : i1 to i32
    %c0_i32_0 = arith.constant 0 : i32
    %2 = arith.cmpi ne, %1, %c0_i32_0 : i32
    scf.if %2 {
      %cst_15 = arith.constant 0.000000e+00 : f32
      %24 = vector.broadcast %cst_15 : f32 to vector<16x128xf32>
      %c0_16 = arith.constant 0 : index
      %c0_17 = arith.constant 0 : index
      %25 = vector.load %arg11[%c0_16, %c0_17] : memref<16x128xf32, #tpu.memory_space<vmem>>, vector<16x128xf32>
      tpu.vector_store %arg11[%c0_16, %c0_17], %24 {strides = array<i32>} : memref<16x128xf32, #tpu.memory_space<vmem>>, vector<16x128xf32>,
    } else {
    }
    %c0 = arith.constant 0 : index
    %c0_1 = arith.constant 0 : index
    %3 = vector.load %arg4[%c0, %c0_1] : memref<128x128xf32, #tpu.memory_space<vmem>>, vector<128x128xf32>
    %c0_2 = arith.constant 0 : index
    %c0_3 = arith.constant 0 : index
    %4 = vector.load %arg5[%c0_2, %c0_3] : memref<128x128xf32, #tpu.memory_space<vmem>>, vector<128x128xf32>
    %cst = arith.constant 0.000000e+00 : f32
    %5 = vector.broadcast %cst : f32 to vector<128x128xf32>
    %6 = arith.maximumf %4, %5 : vector<128x128xf32>
    %7 = math.absf %4 : vector<128x128xf32>
    %cst_4 = arith.constant 0.000000e+00 : f32
    %8 = vector.broadcast %cst_4 : f32 to vector<128x128xf32>
    %9 = arith.subf %8, %7 : vector<128x128xf32>
    %10 = math.exp %9 : vector<128x128xf32>
    %11 = math.log1p %10 : vector<128x128xf32>
    %12 = arith.addf %6, %11 : vector<128x128xf32>
    %c0_5 = arith.constant 0 : index
    %c0_6 = arith.constant 0 : index
    %13 = vector.load %arg6[%c0_5, %c0_6] : memref<128x128xf32, #tpu.memory_space<vmem>>, vector<128x128xf32>
    %14 = arith.mulf %12, %13 : vector<128x128xf32>
    %15 = arith.addf %3, %14 : vector<128x128xf32>
    %c0_7 = arith.constant 0 : index
    %c0_8 = arith.constant 0 : index
    %16 = vector.load %arg3[%c0_7, %c0_8] : memref<16x128xf32, #tpu.memory_space<vmem>>, vector<16x128xf32>
    %c0_9 = arith.constant 0 : index
    %c0_10 = arith.constant 0 : index
    %17 = vector.load %arg11[%c0_9, %c0_10] : memref<16x128xf32, #tpu.memory_space<vmem>>, vector<16x128xf32>
    %cst_11 = arith.constant dense<0.000000e+00> : vector<16x128xf32>
    %18 = tpu.matmul %16, %15, %cst_11 {dimension_numbers = #tpu.dot_dimension_numbers<[1], [0], [0], [1], [0, 0, 1, 1], [], []>} : vector<16x128xf32>, vector<128x128xf32>, vector<16x128xf32> -> vector<16x128xf32>
    %19 = arith.addf %17, %18 : vector<16x128xf32>
    %c0_12 = arith.constant 0 : index
    %c0_13 = arith.constant 0 : index
    %20 = vector.load %arg11[%c0_12, %c0_13] : memref<16x128xf32, #tpu.memory_space<vmem>>, vector<16x128xf32>
    tpu.vector_store %arg11[%c0_12, %c0_13], %19 {strides = array<i32>} : memref<16x128xf32, #tpu.memory_space<vmem>>, vector<16x128xf32>,
    %c1_i32 = arith.constant 1 : i32
    %21 = arith.cmpi eq, %arg2, %c1_i32 : i32
    %22 = arith.extui %21 : i1 to i32
    %c0_i32_14 = arith.constant 0 : i32
    %23 = arith.cmpi ne, %22, %c0_i32_14 : i32
    scf.if %23 {
      %c0_15 = arith.constant 0 : index
      %c0_16 = arith.constant 0 : index
      %24 = vector.load %arg7[%c0_15, %c0_16] : memref<1x128xf32, #tpu.memory_space<vmem>>, vector<1x128xf32>
      %c0_17 = arith.constant 0 : index
      %c0_18 = arith.constant 0 : index
      %25 = vector.load %arg8[%c0_17, %c0_18] : memref<1x128xf32, #tpu.memory_space<vmem>>, vector<1x128xf32>
      %cst_19 = arith.constant 0.000000e+00 : f32
      %26 = vector.broadcast %cst_19 : f32 to vector<1x128xf32>
      %27 = arith.maximumf %25, %26 : vector<1x128xf32>
      %28 = math.absf %25 : vector<1x128xf32>
      %cst_20 = arith.constant 0.000000e+00 : f32
      %29 = vector.broadcast %cst_20 : f32 to vector<1x128xf32>
      %30 = arith.subf %29, %28 : vector<1x128xf32>
      %31 = math.exp %30 : vector<1x128xf32>
      %32 = math.log1p %31 : vector<1x128xf32>
      %33 = arith.addf %27, %32 : vector<1x128xf32>
      %c0_21 = arith.constant 0 : index
      %c0_22 = arith.constant 0 : index
      %34 = vector.load %arg9[%c0_21, %c0_22] : memref<1x128xf32, #tpu.memory_space<vmem>>, vector<1x128xf32>
      %35 = arith.mulf %33, %34 : vector<1x128xf32>
      %36 = arith.addf %24, %35 : vector<1x128xf32>
      %c0_23 = arith.constant 0 : index
      %c0_24 = arith.constant 0 : index
      %37 = vector.load %arg11[%c0_23, %c0_24] : memref<16x128xf32, #tpu.memory_space<vmem>>, vector<16x128xf32>
      %38 = vector.broadcast %36 : vector<1x128xf32> to vector<16x128xf32>
      %39 = arith.addf %37, %38 : vector<16x128xf32>
      %c0_25 = arith.constant 0 : index
      %c0_26 = arith.constant 0 : index
      %40 = vector.load %arg10[%c0_25, %c0_26] : memref<16x128xf32, #tpu.memory_space<vmem>>, vector<16x128xf32>
      tpu.vector_store %arg10[%c0_25, %c0_26], %39 {strides = array<i32>} : memref<16x128xf32, #tpu.memory_space<vmem>>, vector<16x128xf32>,
    } else {
    }
    return
  }
  func.func @transform_0(%arg0: i32, %arg1: i32, %arg2: i32) -> (i32, i32) {
    %c0_i32 = arith.constant 0 : i32
    return %arg0, %arg2 : i32, i32
  }
  func.func @transform_1(%arg0: i32, %arg1: i32, %arg2: i32) -> (i32, i32) {
    %c0_i32 = arith.constant 0 : i32
    return %arg2, %arg1 : i32, i32
  }
  func.func @transform_2(%arg0: i32, %arg1: i32, %arg2: i32) -> (i32, i32) {
    %c0_i32 = arith.constant 0 : i32
    return %arg2, %arg1 : i32, i32
  }
  func.func @transform_3(%arg0: i32, %arg1: i32, %arg2: i32) -> (i32, i32) {
    %c0_i32 = arith.constant 0 : i32
    return %arg2, %arg1 : i32, i32
  }
  func.func @transform_4(%arg0: i32, %arg1: i32, %arg2: i32) -> (i32, i32) {
    %c0_i32 = arith.constant 0 : i32
    %c0_i32_0 = arith.constant 0 : i32
    return %c0_i32, %arg1 : i32, i32
  }
  func.func @transform_5(%arg0: i32, %arg1: i32, %arg2: i32) -> (i32, i32) {
    %c0_i32 = arith.constant 0 : i32
    %c0_i32_0 = arith.constant 0 : i32
    return %c0_i32, %arg1 : i32, i32
  }
  func.func @transform_6(%arg0: i32, %arg1: i32, %arg2: i32) -> (i32, i32) {
    %c0_i32 = arith.constant 0 : i32
    %c0_i32_0 = arith.constant 0 : i32
    return %c0_i32, %arg1 : i32, i32
  }
  func.func @transform_7(%arg0: i32, %arg1: i32, %arg2: i32) -> (i32, i32) {
    %c0_i32 = arith.constant 0 : i32
    return %arg0, %arg1 : i32, i32
  }
}

</mosaic_0001>

<bundles_post_ra>
// kernel: tpu_custom_call.1
= control target key start
LH: loop header
LB: loop body
LE: loop exit
PB: predicated region body
PF: predicated region fallthrough
CT: control target
= control target key end

     0   :  { %s2410_s0 = inlined_call_operand.hbm [shape: f32[16,256], index: 0, kind: input, shape index: {}]   ;;  %s2411_s1 = inlined_call_operand.hbm [shape: f32[256,256], index: 1, kind: input, shape index: {}]   ;;  %s2412_s2 = inlined_call_operand.hbm [shape: f32[256,256], index: 2, kind: input, shape index: {}]   ;;  %s2413_s3 = inlined_call_operand.hbm [shape: f32[256,256], index: 3, kind: input, shape index: {}]   ;;  %s2414_s4 = inlined_call_operand.vmem [shape: f32[1,256], index: 4, kind: input, shape index: {}]   ;;  %s2415_s5 = inlined_call_operand.vmem [shape: f32[1,256], index: 5, kind: input, shape index: {}]   ;;  %s2416_s6 = inlined_call_operand.vmem [shape: f32[1,256], index: 6, kind: input, shape index: {}]   ;;  %s2417_s7 = inlined_call_operand.hbm [shape: f32[16,256], index: 7, kind: output, shape index: {}]  }
   0x1   :  { %2439 = sst [smem:[#allocation29_spill]] %s2410_s0 }
   0x2   :  { %2440 = sst [smem:[#allocation30_spill]] %s2411_s1 }
   0x3   :  { %2441 = sst [smem:[#allocation31_spill]] %s2412_s2 }
   0x4   :  { %2442 = sst [smem:[#allocation32_spill]] %s2414_s4 }
   0x5   :  { %2443 = sst [smem:[#allocation33_spill]] %s2415_s5 }
   0x6   :  { %2444 = sst [smem:[#allocation34_spill]] %s2416_s6 }
   0x7   :  { %2445 = sst [smem:[#allocation35_spill]] %s2417_s7 }
   0x8   :  { %12 = vsyncpa [#allocation4], 0 }
   0x9   :  { %14 = vsyncpa [#allocation4 + $0x1], 0 }
   0xa   :  { %15 = vsyncpa [#allocation7], 0 }
   0xb   :  { %17 = vsyncpa [#allocation7 + $0x1], 0 }
   0xc   :  { %18 = vsyncpa [#allocation10], 0 }
   0xd   :  { %20 = vsyncpa [#allocation10 + $0x1], 0 }
   0xe   :  { %21 = vsyncpa [#allocation5], 0 }
   0xf   :  { %23 = vsyncpa [#allocation5 + $0x1], 0  ;;  %s1769_s24 = smov 0   ;;  %s1771_s25 = smov 0  }
  0x10   :  { %s1773_s26 = smov 0   ;;  %s1775_s27 = smov 0  }
  0x11   :  { %s1777_s28 = smov 0   ;;  %s1779_s29 = smov 0  }
  0x12   :  { %s1781_s30 = smov 0   ;;  %s1783_s8 = smov 0  }
  0x13   :  { %s1785_s9 = smov 0   ;;  %s1787_s10 = smov 0  }
  0x14   :  { %s1789_s11 = smov 0   ;;  %s1791_s12 = smov 0  }
  0x15   :  { %s1793_s13 = smov 0   ;;  %s1795_s14 = smov 0  }
  0x16 LB: > { %2446 = sst [smem:[#allocation16_spill]] %s1663_s24  ;;  %s1150_s15 = sadd.s32 4294967294, %s1715_s14   ;;  %s1715_s14 = sphi %s1795_s14, %s29_s14   ;;  %s1711_s13 = sphi %s1793_s13, %s2534_s13   ;;  %s1707_s12 = sphi %s1791_s12, %s2525_s12   ;;  %s1703_s11 = sphi %s1789_s11, %s2524_s11   ;;  %s1699_s10 = sphi %s1787_s10, %s2523_s10   ;;  %s1695_s9 = sphi %s1785_s9, %s2522_s9   ;;  %s1691_s8 = sphi %s1783_s8, %s2533_s8   ;;  %s1687_s30 = sphi %s1781_s30, %s2532_s30   ;;  %s1683_s29 = sphi %s1779_s29, %s2531_s29   ;;  %s1679_s28 = sphi %s1777_s28, %s2530_s28   ;;  %s1675_s27 = sphi %s1775_s27, %s2529_s27   ;;  %s1671_s26 = sphi %s1773_s26, %s2519_s26   ;;  %s1667_s25 = sphi %s1771_s25, %s2528_s25   ;;  %s1663_s24 = sphi %s1769_s24, %s2527_s24  }
  0x17   : > { %2447 = sst [smem:[#allocation17_spill]] %s1671_s26  ;;  %s41_s16 = sadd.s32 1, %s1707_s12 }
  0x18   : > { %2448 = sst [smem:[#allocation18_spill]] %s1695_s9  ;;  %p42_p0 = scmp.ge.s32.totalorder %s41_s16, 2 }
  0x19   : > { %2449 = sst [smem:[#allocation19_spill]] %s1699_s10  ;;  %s44_s17 = sadd.s32 1, %s1711_s13 }
  0x1a   : > { %2450 = sst [smem:[#allocation20_spill]] %s1707_s12  ;;  %p65_p1 = scmp.eq.s32.totalorder %s1715_s14, 0 }
  0x1b   : > { %2451 = sst [smem:[#allocation21_spill]] %s1711_s13  ;;  %s85_s18 = sadd.s32 1, %s1683_s29 }
  0x1c   : > { %s2536_s16 = smov (%p42_p0, %s41_s16), 0  ;;  %s2538_s17 = smov (!%p42_p0, %s44_s17), %s1711_s13 }
  0x1d   : > { %2452 = sst [smem:[#allocation22_spill]] %s2536_s16  ;;  %s1849_s19 = ssub.s32 %s1707_s12, %s2536_s16 }
  0x1e   : > { %p92_p2 = scmp.ne.s32.totalorder %s1683_s29, %s1679_s28  ;;  %p46_p3 = scmp.ge.s32.totalorder %s2538_s17, 2 }
  0x1f   : > { %p55_p4 = scmp.eq.s32.totalorder %s1849_s19, 0  ;;  %s247_s21 = sadd.s32 1, %s1671_s26 }
  0x20   : > { %p1856_p5 = por %p92_p2, %p65_p1  ;;  %s2540_s17 = smov (%p46_p3, %s2538_s17), 0 }
  0x21   : > { %2454 = sst [smem:[#allocation23_spill]] %s2540_s17  ;;  %s81_s22 = ssub.s32 %s1711_s13, %s2540_s17 }
  0x22   : > { %p263_p8 = scmp.ne.s32.totalorder %s1667_s25, %s1663_s24  ;;  %s82_s23 = sor.u32 %s81_s22, %s1849_s19 }
  0x23   : > { %p245_p9 = scmp.eq.s32.totalorder %s81_s22, 0  ;;  %p83_p10 = scmp.eq.s32.totalorder %s82_s23, 0 }
  0x24   : > { %p264_p11 = scmp.eq.s32.totalorder %s1150_s15, 3  ;;  %p2423_p13 = scmp.lt.s32.totalorder %s1715_s14, 4 }
  0x25   : > { %s1873_s16 = scalar_select %p245_p9, %s1671_s26, %s247_s21  }
  0x26   : > { %s1876_s7 = scalar_select %p83_p10, %s1683_s29, %s85_s18  }
  0x27   : > { %2455 = sst [smem:[#allocation24_spill]] %s1873_s16  ;;  %p1878_p12 = por %p264_p11, %p263_p8 }
  0x28   : > { %2456 = sst [smem:[#allocation25_spill]] %s1876_s7  ;;  %s307_s6 = sand.u32 1, %s1715_s14  }
  0x29   : > { %s2457_s10 = scalar_select %p1878_p12, 1, 0 }
  0x2a   : > { %s2424_s17 = sand.u32 1, %s1683_s29   ;;  %s1179_s22 = sshll.u32 %s1707_s12, 5 }
  0x2b   : > { %2458 = sst [smem:[#allocation26_spill]] %s2457_s10  ;;  %s1887_s24 = sshll.u32 %s2424_s17, 7 }
  0x2c   : > { %s317_s23 = sadd.s32 %s1711_s13, %s1179_s22  ;;  %s311_s15 = scalar_lea.vmem [#allocation6], %s1887_s24 }
  0x2d   : > { %s320_s5 = sshll.u32 %s311_s15, 4  ;;  %s1892_s21 = sshll.u32 %s317_s23, 7  ;;  %s321_s5 = int_to_ptr.vmem [resolvable:$true] %s320_s5 }
  0x2e   : > { %s2459_s1 = sld [smem:[#allocation30_spill]]  ;;  %p1902_p0 = pnand %p2423_p13, %p1856_p5 }
  0x2f   : > { %p1167_p2 = scmp.ge.s32.totalorder %s1715_s14, 1  ;;  %p392_p3 = scmp.lt.s32.totalorder %s1715_s14, 5 }
  0x30   : > { %s1908_s22 = scalar_lea.sflag [#allocation7], %s307_s6  ;;  %p2427_p8 = pneg %p1902_p0 }
  0x31   : > { %s1464_s23 = scalar_lea.vmem %s321_s5, 2048  ;;  %s1717_s7 = smov [#allocation6]  }
  0x32   : > { %p1465_p9 = scmp.ne.s32.totalorder %s321_s5, %s1464_s23  ;;  %s1469_s20 = sshll.u32 %s1717_s7, 4  ;;  %s1470_s20 = int_to_ptr.vmem [resolvable:$false] %s1469_s20 }
  0x33   : > { %s1471_s15 = scalar_lea.vmem %s1470_s20, 4096  ;;  %p1472_p5 = scmp.lt.s32.totalorder %s321_s5, %s1470_s20 }
  0x34   : > { %s319_s16 = scalar_lea.hbm %s2459_s1, %s1892_s21  ;;  %p1467_p10 = pnand %p1465_p9, %p2427_p8 }
  0x35   : > { %p1473_p13 = scmp.lt.s32.totalorder %s1471_s15, %s1464_s23 }
  0x36   : > { %p1468_p11 = pneg %p1467_p10 }
  0x37   : > { %p1474_p7 = por %p1473_p13, %p1472_p5 }
  0x39   : > { %p1475_p6 = pnand %p1474_p7, %p1468_p11 }
  0x3b   : > { %1478 = shalt.err (!%p1475_p6)
}
  0x3c   : > { %s2425_s18 = smov 256   ;;  %s2428_s6 = smov 128  }
  0x3d   : > { %s2430_s23 = smov 8   ;;  %p1925_p6 = pnand %p1167_p2, %p392_p3 }
  0x3e   : > { %1251 = dma.hbm_to_vmem [thread:$0]  (!%p1902_p0), %s319_s16, 2048, %s321_s5, %s1908_s22, %s2425_s18, %s2428_s6, %s2430_s23  }
  0x3f   : > { %s1930_s20 = sadd.s32 4294967295, %s1715_s14   ;;  %s57_s15 = sadd.s32 1, %s1695_s9 }
  0x40   : > { %s1936_s17 = scalar_select %p55_p4, %s1695_s9, %s57_s15  }
  0x41   : > { %p64_p7 = scmp.ne.s32.totalorder %s1695_s9, %s1691_s8  ;;  %p70_p13 = scmp.ne.s32.totalorder %s1691_s8, %s1687_s30 }
  0x42   : > { %2462 = sst [smem:[#allocation27_spill]] %s1936_s17  ;;  %p71_p9 = scmp.eq.s32.totalorder %s1930_s20, 0 }
  0x43   : > { %p258_p10 = scmp.eq.s32.totalorder %s1930_s20, 3  ;;  %p66_p11 = por %p65_p1, %p64_p7 }
  0x44   : > { %s284_s5 = sand.u32 1, %s1695_s9   ;;  %p1947_p2 = por %p71_p9, %p70_p13 }
  0x45   : > { %p2464_p3 = scmp.ne.s32.totalorder %s1679_s28, %s1675_s27  ;;  %p2466_p8 = scmp.ne.s32.totalorder %s1671_s26, %s1667_s25 }
  0x46   : > { %s1153_s30 = sshll.u32 %s284_s5, 4  ;;  %s1154_s15 = sshll.u32 %s1707_s12, 7 }
  0x47   : > { %p1954_p5 = por %p2464_p3, %p71_p9  ;;  %p1961_p4 = por %p258_p10, %p2466_p8 }
  0x48   : > { %s2469_s0 = sld [smem:[#allocation29_spill]]  ;;  %s288_s13 = scalar_lea.vmem [#allocation3], %s1153_s30 }
  0x49   : > { %s2467_s19 = scalar_select %p1961_p4, 1, 0 }
  0x4a   : > { %s297_s17 = sshll.u32 %s288_s13, 4  ;;  %p2470_p1 = scmp.lt.s32.totalorder %s1715_s14, 4  ;;  %s298_s17 = int_to_ptr.vmem [resolvable:$true] %s297_s17 }
  0x4b   : > { %2468 = sst [smem:[#allocation28_spill]] %s2467_s19  ;;  %s285_s19 = scalar_lea.sflag [#allocation4], %s284_s5 }
  0x4c   : > { %p1971_p7 = pnand %p2470_p1, %p66_p11  ;;  %s2472_s2 = sld [smem:[#allocation31_spill]] }
  0x4d   : > { %s1492_s12 = scalar_lea.vmem %s298_s17, 256  ;;  %s1721_s6 = smov [#allocation3]  }
  0x4e   : > { %s296_s1 = scalar_lea.hbm %s2469_s0, %s1154_s15  ;;  %p1481_p8 = pneg %p1971_p7 }
  0x4f   : > { %p1493_p13 = scmp.ne.s32.totalorder %s298_s17, %s1492_s12  ;;  %s1497_s13 = sshll.u32 %s1721_s6, 4  ;;  %s1498_s13 = int_to_ptr.vmem [resolvable:$false] %s1497_s13 }
  0x50   : > { %s1499_s23 = scalar_lea.vmem %s1498_s13, 512  ;;  %p1500_p11 = scmp.lt.s32.totalorder %s298_s17, %s1498_s13 }
  0x51   : > { %p1495_p9 = pnand %p1493_p13, %p1481_p8  ;;  %p1501_p3 = scmp.lt.s32.totalorder %s1499_s23, %s1492_s12 }
  0x53   : > { %p1496_p10 = pneg %p1495_p9  ;;  %p1502_p1 = por %p1501_p3, %p1500_p11 }
  0x55   : > { %p1503_p12 = pnand %p1502_p1, %p1496_p10 }
  0x57   : > { %1506 = shalt.err (!%p1503_p12)
}
  0x58   : > { %s2473_s26 = smov 8   ;;  %s2474_s9 = smov 128  }
  0x59   : > { %s2475_s5 = smov 256   ;;  %s334_s30 = scalar_lea.vmem [#allocation8], %s1887_s24 }
  0x5a   : > { %1248 = dma.hbm_to_vmem [thread:$0]  (!%p1971_p7), %s296_s1, 256, %s298_s17, %s285_s19, %s2475_s5, %s2474_s9, %s2473_s26  }
  0x5b   : > { %s343_s15 = sshll.u32 %s334_s30, 4  ;;  %p2476_p13 = pneg %p1902_p0  ;;  %s344_s15 = int_to_ptr.vmem [resolvable:$true] %s343_s15 }
  0x5c   : > { %s1520_s4 = scalar_lea.vmem %s344_s15, 2048  ;;  %s1722_s12 = smov [#allocation8]  }
  0x5d   : > { %p1521_p8 = scmp.ne.s32.totalorder %s344_s15, %s1520_s4  ;;  %s1525_s6 = sshll.u32 %s1722_s12, 4  ;;  %s1526_s6 = int_to_ptr.vmem [resolvable:$false] %s1525_s6 }
  0x5e   : > { %s1527_s13 = scalar_lea.vmem %s1526_s6, 4096  ;;  %p1528_p12 = scmp.lt.s32.totalorder %s344_s15, %s1526_s6 }
  0x5f   : > { %p1523_p9 = pnand %p1521_p8, %p2476_p13  ;;  %p1529_p10 = scmp.lt.s32.totalorder %s1527_s13, %s1520_s4 }
  0x61   : > { %p1524_p4 = pneg %p1523_p9  ;;  %p1530_p11 = por %p1529_p10, %p1528_p12 }
  0x63   : > { %p1531_p3 = pnand %p1530_p11, %p1524_p4 }
  0x65   : > { %1534 = shalt.err (!%p1531_p3)
}
  0x66   : > { %s2477_s19 = scalar_lea.hbm %s2472_s2, %s1892_s21  ;;  %s365_s23 = scalar_lea.hbm %s2413_s3, %s1892_s21 }
  0x67   : > { %1254 = dma.hbm_to_vmem [thread:$0]  (!%p1902_p0), %s2477_s19, 2048, %s344_s15, %s1908_s22, %s2475_s5, %s2474_s9, %s2473_s26  }
  0x68   : > { %s357_s30 = scalar_lea.vmem [#allocation9], %s1887_s24  ;;  %s2478_s6 = sand.u32 1, %s1683_s29  }
  0x69   : > { %s366_s12 = sshll.u32 %s357_s30, 4  ;;  %s354_s13 = scalar_lea.sflag [#allocation10], %s2478_s6  ;;  %s367_s12 = int_to_ptr.vmem [resolvable:$true] %s366_s12 }
  0x6a   : > { %s1548_s0 = scalar_lea.vmem %s367_s12, 2048  ;;  %p2479_p7 = pmov %p2476_p13 }
  0x6b   : > { %p1549_p4 = scmp.ne.s32.totalorder %s367_s12, %s1548_s0  ;;  %s1723_s1 = smov [#allocation9]  }
  0x6c   : > { %s1553_s17 = sshll.u32 %s1723_s1, 4  ;;  %s1554_s17 = int_to_ptr.vmem [resolvable:$false] %s1553_s17 }
  0x6d   : > { %p1551_p1 = pnand %p1549_p4, %p2479_p7  ;;  %s1555_s2 = scalar_lea.vmem %s1554_s17, 4096 }
  0x6e   : > { %p1556_p13 = scmp.lt.s32.totalorder %s367_s12, %s1554_s17  ;;  %p1557_p9 = scmp.lt.s32.totalorder %s1555_s2, %s1548_s0 }
  0x6f   : > { %p1552_p8 = pneg %p1551_p1 }
  0x70   : > { %p1558_p12 = por %p1557_p9, %p1556_p13 }
  0x72   : > { %p1559_p10 = pnand %p1558_p12, %p1552_p8 }
  0x74   : > { %1562 = shalt.err (!%p1559_p10)
}
  0x75   : > { %1257 = dma.hbm_to_vmem [thread:$0]  (!%p1902_p0), %s365_s23, 2048, %s367_s12, %s354_s13, %s2475_s5, %s2474_s9, %s2473_s26  }
  0x76   : > { %396 = sbr.rel (%p1925_p6) target bundleno = 528 (0x210), region = 48  ;;  %s398_s24 = sand.u32 (!%p1925_p6), 1, %s1691_s8  }
  0x77   : > { %s2019_s21 = sshll.u32 (!%p1925_p6), %s398_s24, 4  ;;  %s399_s22 = scalar_lea.sflag (!%p1925_p6), [#allocation4], %s398_s24 }
  0x78   : > { %s402_s0 = scalar_lea.vmem (!%p1925_p6), [#allocation3], %s2019_s21 }
  0x7b   : > { %1646 = dma.done.wait (%p1947_p2), %s399_s22, 256  }
  0x7c   : > { %1648 = vsyncadd (%p1947_p2), %s399_s22, 4294967040  ;;  %s407_s2 = sand.u32 1, %s1930_s20   ;;  %s409_s10 = sand.u32 1, %s1679_s28  }
  0x7d   : > { %s1169_s7 = sshll.u32 %s409_s10, 7  ;;  %s408_s26 = scalar_lea.sflag [#allocation7], %s407_s2 }
  0x7e   : > { %s2028_s9 = scalar_lea.vmem [#allocation6], %s1169_s7 }
  0x7f   : > { %1650 = dma.done.wait (%p1954_p5), %s408_s26, 4096  }
  0x80   : > { %1652 = vsyncadd (%p1954_p5), %s408_s26, 4294963200  ;;  %s2034_s5 = scalar_lea.vmem [#allocation8], %s1169_s7  ;;  %s426_s15 = scalar_lea.sflag [#allocation10], %s409_s10 }
  0x81   : > { %s2036_s16 = scalar_lea.vmem [#allocation9], %s1169_s7 }
  0x82   : > { %1654 = dma.done.wait (%p1954_p5), %s426_s15, 2048  }
  0x83   : > { %1656 = vsyncadd (%p1954_p5), %s426_s15, 4294965248  ;;  %s481_s20 = sand.u32 1, %s1667_s25   ;;  %p488_p0 = scmp.lt.s32.totalorder %s1703_s11, 1 }
  0x84   : > { %s1172_s19 = sshll.u32 %s481_s20, 4  ;;  %s2480_s30 = sld [smem:[#allocation32_spill]] }
  0x85   : > { %s2047_s4 = scalar_select %p488_p0, %s1703_s11, 1 }
  0x86   : > { %s2481_s13 = sld [smem:[#allocation33_spill]]  ;;  %s2061_s10 = scalar_lea.vmem [#allocation11], %s1172_s19 }
  0x87   : > { %s2482_s22 = sld [smem:[#allocation34_spill]] }
  0x88   : > { %s2483_s7 = sld [smem:[#allocation19_spill]] }
  0x8a   : > { %s490_s12 = scalar_lea.vmem %s2480_s30, %s2047_s4 }
  0x8c   : > { %s493_s1 = scalar_lea.vmem %s2481_s13, %s2047_s4 }
  0x8d   : > { %s496_s2 = scalar_lea.vmem %s2482_s22, %s2047_s4 }
  0x8e   : > { %p1173_p6 = scmp.ne.s32.totalorder %s2483_s7, 0 }
  0x90   : > { %501 = sbr.rel (%p1173_p6) target bundleno = 151 (0x97), region = 68 }
  0x95   : > { %v1724_v0 = vmov 0.0  }
  0x96   : > { %502 = vst [vmem:[#allocation2] sm:$0xff] %v1724_v0  ;;  %503 = vst [vmem:[#allocation2 + $0x8] sm:$0xff] %v1724_v0 }
  0x97 PF: > { %v2065_v1 = vld [vmem:[%s2034_s5 + $0x78] sm:$0xff]  ;;  %v2069_v3 = vld [vmem:[%s2034_s5 + $0x70] sm:$0xff]  ;;  %v2073_v5 = vld [vmem:[%s2034_s5 + $0x68] sm:$0xff]  ;;  %s2507_s26 = sld [smem:[#allocation19_spill]] }
  0x98   : > { %v567_v2 = vand.u32 2147483647, %v2065_v1  ;;  %v566_v4 = vand.u32 2147483647, %v2069_v3  ;;  %v565_v7 = vand.u32 2147483647, %v2073_v5 }
  0x99   : > { %v2077_v8 = vld [vmem:[%s2034_s5 + $0x60] sm:$0xff]  ;;  %v2081_v13 = vld [vmem:[%s2034_s5 + $0x58] sm:$0xff]  ;;  %v2085_v18 = vld [vmem:[%s2034_s5 + $0x50] sm:$0xff]  ;;  %v551_v43 = vmax.f32 %v2065_v1, 0.0  ;;  %v550_v45 = vmax.f32 %v2069_v3, 0.0  ;;  %v549_v46 = vmax.f32 %v2073_v5, 0.0 }
  0x9a   : > { %v583_v6 = vsub.f32 0.0, %v567_v2  ;;  %v582_v9 = vsub.f32 0.0, %v566_v4  ;;  %v564_v10 = vand.u32 2147483647, %v2077_v8  ;;  %v581_v12 = vsub.f32 0.0, %v565_v7  ;;  %v2088_v21 = vld [vmem:[%s2034_s5 + $0x48] sm:$0xff] }
  0x9b   : > { %v563_v16 = vand.u32 2147483647, %v2081_v13  ;;  %v562_v22 = vand.u32 2147483647, %v2085_v18  ;;  %v561_v23 = vand.u32 2147483647, %v2088_v21 }
  0x9c   : > { %v614_v11 = vmul.f32 1.442695, %v583_v6  ;;  %v612_v14 = vmul.f32 1.442695, %v582_v9  ;;  %v580_v15 = vsub.f32 0.0, %v564_v10  ;;  %v2093_v25 = vld [vmem:[%s2034_s5 + $0x40] sm:$0xff] }
  0x9d   : > { %v610_v17 = vmul.f32 1.442695, %v581_v12  ;;  %v579_v20 = vsub.f32 0.0, %v563_v16  ;;  %v578_v26 = vsub.f32 0.0, %v562_v22  ;;  %v577_v27 = vsub.f32 0.0, %v561_v23  ;;  %v2097_v29 = vld [vmem:[%s2034_s5 + $0x38] sm:$0xff] }
  0x9e   : > { %1383 = vpow2.f32 %v614_v11  ;;  %v608_v19 = vmul.f32 1.442695, %v580_v15  ;;  %v560_v28 = vand.u32 2147483647, %v2093_v25  ;;  %v559_v30 = vand.u32 2147483647, %v2097_v29 }
  0x9f   : > { %1385 = vpow2.f32 %v612_v14  ;;  %v606_v24 = vmul.f32 1.442695, %v579_v20  ;;  %v2101_v31 = vld [vmem:[%s2034_s5 + $0x30] sm:$0xff]  ;;  %v604_v32 = vmul.f32 1.442695, %v578_v26  ;;  %v2105_v37 = vld [vmem:[%s2034_s5 + $0x28] sm:$0xff] }
  0xa0   : > { %1387 = vpow2.f32 %v610_v17  ;;  %v602_v33 = vmul.f32 1.442695, %v577_v27  ;;  %v576_v34 = vsub.f32 0.0, %v560_v28  ;;  %v575_v35 = vsub.f32 0.0, %v559_v30  ;;  %v2109_v42 = vld [vmem:[%s2034_s5 + $0x20] sm:$0xff]  ;;  %v2117_v51 = vld [vmem:[%s2034_s5 + $0x18] sm:$0xff] }
  0xa1   : > { %1389 = vpow2.f32 %v608_v19  ;;  %v558_v36 = vand.u32 2147483647, %v2101_v31  ;;  %v557_v39 = vand.u32 2147483647, %v2105_v37  ;;  %v548_v48 = vmax.f32 %v2077_v8, 0.0  ;;  %v2127_v12 = vld [vmem:[%s2034_s5 + $0x10] sm:$0xff] }
  0xa2   : > { %1391 = vpow2.f32 %v606_v24  ;;  %v600_v38 = vmul.f32 1.442695, %v576_v34  ;;  %v598_v40 = vmul.f32 1.442695, %v575_v35  ;;  %v556_v50 = vand.u32 2147483647, %v2109_v42 }
  0xa3   : > { %1393 = vpow2.f32 %v604_v32  ;;  %v574_v41 = vsub.f32 0.0, %v558_v36  ;;  %v573_v44 = vsub.f32 0.0, %v557_v39  ;;  %v547_v53 = vmax.f32 %v2081_v13, 0.0  ;;  %v824_v14 = vld [vmem:[%s402_s0] sm:$0xff]  ;;  %p1174_p2 = scmp.ne.s32.totalorder %s2507_s26, 1 }
  0xa4   : > { %1395 = vpow2.f32 %v602_v33  ;;  %v546_v54 = vmax.f32 %v2085_v18, 0.0  ;;  %v545_v55 = vmax.f32 %v2088_v21, 0.0  ;;  %v544_v59 = vmax.f32 %v2093_v25, 0.0  ;;  %1232 = vmatprep.mubr.f32.mxu0 %v824_v14 }
  0xa5   : > { %1397 = vpow2.f32 %v600_v38  ;;  %v596_v47 = vmul.f32 1.442695, %v574_v41  ;;  %v594_v49 = vmul.f32 1.442695, %v573_v44  ;;  %v543_v60 = vmax.f32 %v2097_v29, 0.0  ;;  %v511_v29 = vld [vmem:[%s2028_s9 + $0x38] sm:$0xff] }
  0xa6   : > { %1399 = vpow2.f32 %v598_v40  ;;  %v555_v0 = vand.u32 2147483647, %v2117_v51  ;;  %v542_v6 = vmax.f32 %v2101_v31, 0.0  ;;  %v572_v7 = vsub.f32 0.0, %v556_v50 }
  0xa7   : > { %1401 = vpow2.f32 %v596_v47  ;;  %v554_v28 = vand.u32 2147483647, %v2127_v12  ;;  %v2506_v31 = vmax.f32 %v2105_v37, 0.0 }
  0xa8   : > { %1403 = vpow2.f32 %v594_v49  ;;  %v2132_v24 = vsub.f32 0.0, %v555_v0  ;;  %v2139_v35 = vmul.f32 1.442695, %v572_v7 }
  0xab   : > { %v1384_v52 = vpop.eup %1383 }
  0xac   : > { %v1386_v56 = vpop.eup %1385  ;;  %v751_v57 = vadd.f32 1.0, %v1384_v52  ;;  %v754_v58 = vmul.f32 -0.5, %v1384_v52  ;;  %v757_v10 = vand.u32 2147483647, %v1384_v52 }
  0xad   : > { %v1388_v61 = vpop.eup %1387  ;;  %v742_v62 = vadd.f32 1.0, %v1386_v56  ;;  %v745_v63 = vmul.f32 -0.5, %v1386_v56  ;;  %v748_v16 = vand.u32 2147483647, %v1386_v56 }
  0xae   : > { %v1390_v2 = vpop.eup %1389  ;;  %1405 = vlog2.f32 %v751_v57  ;;  %v733_v4 = vadd.f32 1.0, %v1388_v61  ;;  %v755_v9 = vadd.f32 1.0, %v754_v58  ;;  %v736_v11 = vmul.f32 -0.5, %v1388_v61 }
  0xaf   : > { %1407 = vlog2.f32 %v742_v62  ;;  %v1392_v15 = vpop.eup %1391  ;;  %v724_v17 = vadd.f32 1.0, %v1390_v2  ;;  %v746_v20 = vadd.f32 1.0, %v745_v63  ;;  %v739_v22 = vand.u32 2147483647, %v1388_v61 }
  0xb0   : > { %1409 = vlog2.f32 %v733_v4  ;;  %v727_v23 = vmul.f32 -0.5, %v1390_v2  ;;  %v715_v26 = vadd.f32 1.0, %v1392_v15  ;;  %v718_v27 = vmul.f32 -0.5, %v1392_v15  ;;  %v1394_v30 = vpop.eup %1393 }
  0xb1   : > { %1411 = vlog2.f32 %v724_v17  ;;  %v756_v32 = vmul.f32 %v1384_v52, %v755_v9  ;;  %vm2135_vm0 = vcmp.lt.f32.partialorder %v757_v10, 0.0004427343  ;;  %v737_v34 = vadd.f32 1.0, %v736_v11  ;;  %v1396_v36 = vpop.eup %1395 }
  0xb2   : > { %vm2141_vm1 = vcmp.lt.f32.partialorder %v748_v16, 0.0004427343  ;;  %v730_v39 = vand.u32 2147483647, %v1390_v2  ;;  %1413 = vlog2.f32 %v715_v26  ;;  %v706_v40 = vadd.f32 1.0, %v1394_v30  ;;  %v1398_v44 = vpop.eup %1397 }
  0xb3   : > { %v709_v41 = vmul.f32 -0.5, %v1394_v30  ;;  %v747_v47 = vmul.f32 %v1386_v56, %v746_v20  ;;  %vm2145_vm2 = vcmp.lt.f32.partialorder %v739_v22, 0.0004427343  ;;  %v728_v50 = vadd.f32 1.0, %v727_v23  ;;  %v1400_v57 = vpop.eup %1399 }
  0xb4   : > { %v697_v52 = vadd.f32 1.0, %v1396_v36  ;;  %v719_v58 = vadd.f32 1.0, %v718_v27  ;;  %v721_v62 = vand.u32 2147483647, %v1392_v15  ;;  %1415 = vlog2.f32 %v706_v40  ;;  %v2149_v9 = vpop.eup %1401 }
  0xb5   : > { %v700_v63 = vmul.f32 -0.5, %v1396_v36  ;;  %v738_v0 = vmul.f32 %v1388_v61, %v737_v34  ;;  %v712_v4 = vand.u32 2147483647, %v1394_v30  ;;  %v688_v7 = vadd.f32 1.0, %v1398_v44  ;;  %v2155_v22 = vpop.eup %1403 }
  0xb6   : > { %1417 = vlog2.f32 %v697_v52  ;;  %vm2151_vm3 = vcmp.lt.f32.partialorder %v730_v39, 0.0004427343  ;;  %v710_v56 = vadd.f32 1.0, %v709_v41  ;;  %v703_v11 = vand.u32 2147483647, %v1396_v36 }
  0xb7   : > { %v691_v14 = vmul.f32 -0.5, %v1398_v44  ;;  %v701_v16 = vadd.f32 1.0, %v700_v63  ;;  %1419 = vlog2.f32 %v688_v7  ;;  %v679_v17 = vadd.f32 1.0, %v1400_v57 }
  0xb8   : > { %v682_v20 = vmul.f32 -0.5, %v1400_v57  ;;  %v729_v23 = vmul.f32 %v1390_v2, %v728_v50  ;;  %v2157_v61 = vmul.f32 %v1392_v15, %v719_v58  ;;  %vm2159_vm4 = vcmp.lt.f32.partialorder %v721_v62, 0.0004427343 }
  0xb9   : > { %v692_v27 = vadd.f32 1.0, %v691_v14  ;;  %vm2163_vm5 = vcmp.lt.f32.partialorder %v712_v4, 0.0004427343  ;;  %v694_v40 = vand.u32 2147483647, %v1398_v44  ;;  %1421 = vlog2.f32 %v679_v17 }
  0xba   : > { %v670_v41 = vadd.f32 1.0, %v2149_v9  ;;  %v673_v52 = vmul.f32 -0.5, %v2149_v9  ;;  %v2169_v50 = vmul.f32 %v1394_v30, %v710_v56  ;;  %vm2171_vm6 = vcmp.lt.f32.partialorder %v703_v11, 0.0004427343 }
  0xbb   : > { %v1406_v34 = vpop.eup %1405  ;;  %v685_v62 = vand.u32 2147483647, %v1400_v57  ;;  %v2175_v7 = vmul.f32 %v1396_v36, %v701_v16  ;;  %v683_v14 = vadd.f32 1.0, %v682_v20  ;;  %v2180_v56 = vmul.f32 %v1398_v44, %v692_v27  ;;  %v790_v16 = vld [vmem:[%s2036_s16 + $0x70] sm:$0xff]  ;;  %v519_v44 = vld [vmem:[%s2028_s9 + $0x78] sm:$0xff] }
  0xbc   : > { %v1408_v2 = vpop.eup %1407  ;;  %v753_v15 = vmul.f32 0.6931472, %v1406_v34  ;;  %1423 = vlog2.f32 %v670_v41  ;;  %v791_v34 = vld [vmem:[%s2036_s16 + $0x78] sm:$0xff]  ;;  %v661_v11 = vadd.f32 1.0, %v2155_v22  ;;  %vm2188_vm7 = vcmp.lt.f32.partialorder %v694_v40, 0.0004427343 }
  0xbd   : > { %v1410_v63 = vpop.eup %1409  ;;  %v744_v4 = vmul.f32 0.6931472, %v1408_v2  ;;  %v664_v33 = vmul.f32 -0.5, %v2155_v22  ;;  %vm2199_vm8 = vcmp.lt.f32.partialorder %v685_v62, 0.0004427343  ;;  %v2206_v3 = vmul.f32 %v1400_v57, %v683_v14  ;;  %v788_v62 = vld [vmem:[%s2036_s16 + $0x60] sm:$0xff] }
  0xbe   : > { %v759_v17 = vsel %vm2135_vm0, %v756_v32, %v753_v15  ;;  %v735_v30 = vmul.f32 0.6931472, %v1410_v63  ;;  %v1412_v19 = vpop.eup %1411  ;;  %v674_v32 = vadd.f32 1.0, %v673_v52  ;;  %1425 = vlog2.f32 %v661_v11  ;;  %v518_v52 = vld [vmem:[%s2028_s9 + $0x70] sm:$0xff] }
  0xbf   : > { %v775_v2 = vadd.f32 %v759_v17, %v551_v43  ;;  %v750_v36 = vsel %vm2141_vm1, %v747_v47, %v744_v4  ;;  %v789_v43 = vld [vmem:[%s2036_s16 + $0x68] sm:$0xff]  ;;  %v726_v38 = vmul.f32 0.6931472, %v1412_v19  ;;  %v1414_v40 = vpop.eup %1413  ;;  %1427 = vpow2.f32 %v2139_v35 }
  0xc0   : > { %v774_v27 = vadd.f32 %v750_v36, %v550_v45  ;;  %v741_v1 = vsel %vm2145_vm2, %v738_v0, %v735_v30  ;;  %v676_v45 = vand.u32 2147483647, %v2149_v9  ;;  %v517_v0 = vld [vmem:[%s2028_s9 + $0x68] sm:$0xff]  ;;  %v717_v63 = vmul.f32 0.6931472, %v1414_v40  ;;  %v516_v30 = vld [vmem:[%s2028_s9 + $0x60] sm:$0xff] }
  0xc1   : > { %v807_v41 = vmul.f32 %v791_v34, %v775_v2  ;;  %v773_v15 = vadd.f32 %v741_v1, %v549_v46  ;;  %v732_v19 = vsel %vm2151_vm3, %v729_v23, %v726_v38  ;;  %v1416_v4 = vpop.eup %1415  ;;  %v2217_v57 = vmul.f32 %v2149_v9, %v674_v32  ;;  %v787_v23 = vld [vmem:[%s2036_s16 + $0x58] sm:$0xff] }
  0xc2   : > { %v806_v49 = vmul.f32 %v790_v16, %v774_v27  ;;  %v772_v46 = vadd.f32 %v732_v19, %v548_v48  ;;  %v723_v10 = vsel %vm2159_vm4, %v2157_v61, %v717_v63  ;;  %v708_v35 = vmul.f32 0.6931472, %v1416_v4  ;;  %v515_v16 = vld [vmem:[%s2028_s9 + $0x58] sm:$0xff]  ;;  %v786_v48 = vld [vmem:[%s2036_s16 + $0x50] sm:$0xff]  ;;  %v2236_v27 = vld [vmem:[%s2034_s5 + $0x8] sm:$0xff] }
  0xc3   : > { %v823_v17 = vadd.f32 %v807_v41, %v519_v44  ;;  %v805_v5 = vmul.f32 %v789_v43, %v773_v15  ;;  %v1418_v14 = vpop.eup %1417  ;;  %v665_v11 = vadd.f32 1.0, %v664_v33  ;;  %v771_v8 = vadd.f32 %v723_v10, %v547_v53  ;;  %v513_v15 = vld [vmem:[%s2028_s9 + $0x48] sm:$0xff]  ;;  %v783_v4 = vld [vmem:[%s2036_s16 + $0x38] sm:$0xff] }
  0xc4   : > { %v822_v34 = vadd.f32 %v806_v49, %v518_v52  ;;  %v804_v36 = vmul.f32 %v788_v62, %v772_v46  ;;  %v699_v9 = vmul.f32 0.6931472, %v1418_v14  ;;  %v1420_v32 = vpop.eup %1419  ;;  %v714_v61 = vsel %vm2163_vm5, %v2169_v50, %v708_v35  ;;  %v785_v50 = vld [vmem:[%s2036_s16 + $0x48] sm:$0xff] }
  0xc5   : > { %1200 = vmatprep.subr.mxu0 %v823_v17  ;;  %v821_v2 = vadd.f32 %v805_v5, %v517_v0  ;;  %v667_v26 = vand.u32 2147483647, %v2155_v22  ;;  %v590_v33 = vmul.f32 1.442695, %v2132_v24  ;;  %v570_v44 = vsub.f32 0.0, %v554_v28  ;;  %v514_v24 = vld [vmem:[%s2028_s9 + $0x50] sm:$0xff] }
  0xc6   : > { %1201 = vmatpush3.msra.mxu0 %v823_v17  ;;  %v820_v13 = vadd.f32 %v804_v36, %v516_v30  ;;  %v803_v53 = vmul.f32 %v787_v23, %v771_v8  ;;  %v770_v1 = vadd.f32 %v714_v61, %v546_v54  ;;  %v705_v39 = vsel %vm2171_vm6, %v2175_v7, %v699_v9  ;;  %v1422_v43 = vpop.eup %1421  ;;  %v2249_v7 = vld [vmem:[%s2034_s5] sm:$0xff]  ;;  %v509_v9 = vld [vmem:[%s2028_s9 + $0x28] sm:$0xff] }
  0xc7   : > { %1202 = vmatprep.subr.mxu0 %v822_v34  ;;  %v769_v28 = vadd.f32 %v705_v39, %v545_v55  ;;  %v690_v38 = vmul.f32 0.6931472, %v1420_v32  ;;  %1429 = vpow2.f32 %v590_v33  ;;  %v588_v40 = vmul.f32 1.442695, %v570_v44  ;;  %v784_v55 = vld [vmem:[%s2036_s16 + $0x40] sm:$0xff] }
  0xc8   : > { %1203 = vmatpush3.msra.mxu0 %v822_v34  ;;  %v819_v18 = vadd.f32 %v803_v53, %v515_v16  ;;  %v802_v41 = vmul.f32 %v786_v48, %v770_v1  ;;  %v681_v54 = vmul.f32 0.6931472, %v1422_v43  ;;  %v553_v58 = vand.u32 2147483647, %v2236_v27  ;;  %v781_v16 = vld [vmem:[%s2036_s16 + $0x28] sm:$0xff] }
  0xc9   : > { %1204 = vmatprep.subr.mxu0 %v821_v2  ;;  %v1424_v52 = vpop.eup %1423  ;;  %v801_v49 = vmul.f32 %v785_v50, %v769_v28  ;;  %v696_v21 = vsel %vm2188_vm7, %v2180_v56, %v690_v38  ;;  %vm2256_vm9 = vcmp.lt.f32.partialorder %v676_v45, 0.0004427343  ;;  %1431 = vpow2.f32 %v588_v40  ;;  %v512_v56 = vld [vmem:[%s2028_s9 + $0x40] sm:$0xff] }
  0xca   : > { %1205 = vmatpush3.msra.mxu0 %v821_v2  ;;  %v818_v19 = vadd.f32 %v802_v41, %v514_v24  ;;  %v768_v62 = vadd.f32 %v696_v21, %v544_v59  ;;  %v687_v63 = vsel %vm2199_vm8, %v2206_v3, %v681_v54  ;;  %v672_v20 = vmul.f32 0.6931472, %v1424_v52  ;;  %v782_v3 = vld [vmem:[%s2036_s16 + $0x30] sm:$0xff]  ;;  %v780_v21 = vld [vmem:[%s2036_s16 + $0x20] sm:$0xff] }
  0xcb   : > { %1206 = vmatprep.subr.mxu0 %v820_v13  ;;  %v767_v45 = vadd.f32 %v687_v63, %v543_v60  ;;  %v666_v17 = vmul.f32 %v2155_v22, %v665_v11  ;;  %v569_v5 = vsub.f32 0.0, %v553_v58  ;;  %v552_v46 = vand.u32 2147483647, %v2249_v7  ;;  %v1426_v25 = vpop.eup %1425  ;;  %v508_v63 = vld [vmem:[%s2028_s9 + $0x20] sm:$0xff] }
  0xcc   : > { %1207 = vmatpush3.msra.mxu0 %v820_v13  ;;  %v817_v59 = vadd.f32 %v801_v49, %v513_v15  ;;  %v800_v14 = vmul.f32 %v784_v55, %v768_v62  ;;  %v678_v47 = vsel %vm2256_vm9, %v2217_v57, %v672_v20  ;;  %vm2275_vm10 = vcmp.lt.f32.partialorder %v667_v26, 0.0004427343  ;;  %v1428_v23 = vpop.eup %1427  ;;  %v510_v57 = vld [vmem:[%s2028_s9 + $0x30] sm:$0xff] }
  0xcd   : > { %1208 = vmatprep.subr.mxu0 %v819_v18  ;;  %v799_v60 = vmul.f32 %v783_v4, %v767_v45  ;;  %v766_v22 = vadd.f32 %v678_v47, %v542_v6  ;;  %v663_v30 = vmul.f32 0.6931472, %v1426_v25  ;;  %v586_v10 = vmul.f32 1.442695, %v569_v5  ;;  %v779_v47 = vld [vmem:[%s2036_s16 + $0x18] sm:$0xff] }
  0xce   : > { %1209 = vmatpush3.msra.mxu0 %v819_v18  ;;  %v816_v35 = vadd.f32 %v800_v14, %v512_v56  ;;  %v568_v11 = vsub.f32 0.0, %v552_v46  ;;  %v652_v8 = vadd.f32 1.0, %v1428_v23  ;;  %v655_v13 = vmul.f32 -0.5, %v1428_v23 }
  0xcf   : > { %1210 = vmatprep.subr.mxu0 %v818_v19  ;;  %v798_v2 = vmul.f32 %v782_v3, %v766_v22  ;;  %v669_v36 = vsel %vm2275_vm10, %v666_v17, %v663_v30  ;;  %v815_v48 = vadd.f32 %v799_v60, %v511_v29  ;;  %1433 = vpow2.f32 %v586_v10  ;;  %v778_v30 = vld [vmem:[%s2036_s16 + $0x10] sm:$0xff] }
  0xd0   : > { %1211 = vmatpush3.msra.mxu0 %v818_v19  ;;  %v765_v6 = vadd.f32 %v669_v36, %v2506_v31  ;;  %1435 = vlog2.f32 %v652_v8  ;;  %v584_v32 = vmul.f32 1.442695, %v568_v11  ;;  %v656_v39 = vadd.f32 1.0, %v655_v13  ;;  %v506_v11 = vld [vmem:[%s2028_s9 + $0x10] sm:$0xff]  ;;  %v505_v13 = vld [vmem:[%s2028_s9 + $0x8] sm:$0xff] }
  0xd1   : > { %1212 = vmatprep.subr.mxu0 %v817_v59  ;;  %v814_v61 = vadd.f32 %v798_v2, %v510_v57  ;;  %v658_v50 = vand.u32 2147483647, %v1428_v23  ;;  %v540_v18 = vmax.f32 %v2109_v42, 0.0  ;;  %v539_v42 = vmax.f32 %v2117_v51, 0.0  ;;  %v507_v51 = vld [vmem:[%s2028_s9 + $0x18] sm:$0xff] }
  0xd2   : > { %1213 = vmatpush3.msra.mxu0 %v817_v59  ;;  %v797_v26 = vmul.f32 %v781_v16, %v765_v6  ;;  %1437 = vpow2.f32 %v584_v32  ;;  %v657_v28 = vmul.f32 %v1428_v23, %v656_v39  ;;  %v538_v59 = vmax.f32 %v2127_v12, 0.0 }
  0xd3   : > { %1214 = vmatprep.subr.mxu0 %v816_v35  ;;  %vm659_vm11 = vcmp.lt.f32.partialorder %v658_v50, 0.0004427343 }
  0xd4   : > { %1215 = vmatpush3.msra.mxu0 %v816_v35  ;;  %v1430_v33 = vpop.eup %1429  ;;  %v813_v44 = vadd.f32 %v797_v26, %v509_v9  ;;  %v777_v26 = vld [vmem:[%s2036_s16 + $0x8] sm:$0xff] }
  0xd5   : > { %1216 = vmatprep.subr.mxu0 %v815_v48  ;;  %v643_v53 = vadd.f32 1.0, %v1430_v33  ;;  %v646_v43 = vmul.f32 -0.5, %v1430_v33  ;;  %v649_v15 = vand.u32 2147483647, %v1430_v33 }
  0xd6   : > { %1217 = vmatpush3.msra.mxu0 %v815_v48  ;;  %v1432_v1 = vpop.eup %1431  ;;  %v537_v48 = vmax.f32 %v2236_v27, 0.0 }
  0xd7   : > { %1218 = vmatprep.subr.mxu0 %v814_v61  ;;  %1439 = vlog2.f32 %v643_v53  ;;  %v634_v37 = vadd.f32 1.0, %v1432_v1  ;;  %v637_v38 = vmul.f32 -0.5, %v1432_v1  ;;  %v647_v58 = vadd.f32 1.0, %v646_v43  ;;  %v504_v43 = vld [vmem:[%s2028_s9] sm:$0xff] }
  0xd8   : > { %1219 = vmatpush3.msra.mxu0 %v814_v61  ;;  %v640_v62 = vand.u32 2147483647, %v1432_v1  ;;  %vm650_vm12 = vcmp.lt.f32.partialorder %v649_v15, 0.0004427343 }
  0xd9   : > { %1220 = vmatprep.subr.mxu0 %v813_v44  ;;  %1441 = vlog2.f32 %v634_v37  ;;  %v638_v55 = vadd.f32 1.0, %v637_v38  ;;  %v648_v4 = vmul.f32 %v1430_v33, %v647_v58  ;;  %v536_v33 = vmax.f32 %v2249_v7, 0.0  ;;  %v776_v37 = vld [vmem:[%s2036_s16] sm:$0xff]  ;;  %v825_v38 = vld [vmem:[%s402_s0 + $0x8] sm:$0xff] }
  0xda   : > { %1221 = vmatpush3.msra.mxu0 %v813_v44  ;;  %vm641_vm13 = vcmp.lt.f32.partialorder %v640_v62, 0.0004427343  ;;  %v827_v7 = vld [vmem:[#allocation2 + $0x8] sm:$0xff] }
  0xdb   : > { %v639_v5 = vmul.f32 %v1432_v1, %v638_v55 }
  0xdc   : > { %v1434_v24 = vpop.eup %1433 }
  0xdd   : > { %v1436_v40 = vpop.eup %1435  ;;  %v625_v41 = vadd.f32 1.0, %v1434_v24  ;;  %v628_v45 = vmul.f32 -0.5, %v1434_v24  ;;  %v631_v10 = vand.u32 2147483647, %v1434_v24 }
  0xde   : > { %v654_v54 = vmul.f32 0.6931472, %v1436_v40 }
  0xdf   : > { %v1438_v52 = vpop.eup %1437  ;;  %1443 = vlog2.f32 %v625_v41  ;;  %v629_v60 = vadd.f32 1.0, %v628_v45  ;;  %vm632_vm14 = vcmp.lt.f32.partialorder %v631_v10, 0.0004427343 }
  0xe0   : > { %v660_v49 = vsel %vm659_vm11, %v657_v28, %v654_v54  ;;  %v616_v0 = vadd.f32 1.0, %v1438_v52  ;;  %v619_v34 = vmul.f32 -0.5, %v1438_v52  ;;  %v622_v16 = vand.u32 2147483647, %v1438_v52 }
  0xe1   : > { %v764_v19 = vadd.f32 %v660_v49, %v540_v18  ;;  %v630_v36 = vmul.f32 %v1434_v24, %v629_v60  ;;  %v826_v18 = vld [vmem:[#allocation2] sm:$0xff] }
  0xe2   : > { %1445 = vlog2.f32 %v616_v0  ;;  %v620_v57 = vadd.f32 1.0, %v619_v34  ;;  %vm623_vm15 = vcmp.lt.f32.partialorder %v622_v16, 0.0004427343 }
  0xe3   : > { %v796_v56 = vmul.f32 %v780_v21, %v764_v19 }
  0xe4   : > { %v1440_v20 = vpop.eup %1439  ;;  %v621_v9 = vmul.f32 %v1438_v52, %v620_v57 }
  0xe5   : > { %v645_v17 = vmul.f32 0.6931472, %v1440_v20  ;;  %v812_v25 = vadd.f32 %v796_v56, %v508_v63 }
  0xe6   : > { %v1442_v46 = vpop.eup %1441 }
  0xe7   : > { %v651_v14 = vsel %vm650_vm12, %v648_v4, %v645_v17  ;;  %v636_v3 = vmul.f32 0.6931472, %v1442_v46  ;;  %1222 = vmatprep.subr.mxu0 %v812_v25 }
  0xe8   : > { %v763_v29 = vadd.f32 %v651_v14, %v539_v42  ;;  %1223 = vmatpush3.msra.mxu0 %v812_v25 }
  0xe9   : > { %v642_v22 = vsel %vm641_vm13, %v639_v5, %v636_v3 }
  0xea   : > { %v795_v23 = vmul.f32 %v779_v47, %v763_v29  ;;  %v762_v35 = vadd.f32 %v642_v22, %v538_v59 }
  0xec   : > { %v811_v12 = vadd.f32 %v795_v23, %v507_v51  ;;  %v794_v2 = vmul.f32 %v778_v30, %v762_v35  ;;  %v1444_v8 = vpop.eup %1443 }
  0xed   : > { %v627_v6 = vmul.f32 0.6931472, %v1444_v8 }
  0xee   : > { %1224 = vmatprep.subr.mxu0 %v811_v12  ;;  %v810_v31 = vadd.f32 %v794_v2, %v506_v11 }
  0xef   : > { %1225 = vmatpush3.msra.mxu0 %v811_v12  ;;  %v1446_v32 = vpop.eup %1445  ;;  %v633_v61 = vsel %vm632_vm14, %v630_v36, %v627_v6 }
  0xf0   : > { %1226 = vmatprep.subr.mxu0 %v810_v31  ;;  %v761_v44 = vadd.f32 %v633_v61, %v537_v48  ;;  %v618_v27 = vmul.f32 0.6931472, %v1446_v32 }
  0xf1   : > { %1227 = vmatpush3.msra.mxu0 %v810_v31 }
  0xf2   : > { %v793_v53 = vmul.f32 %v777_v26, %v761_v44  ;;  %v624_v1 = vsel %vm623_vm15, %v621_v9, %v618_v27 }
  0xf3   : > { %v760_v39 = vadd.f32 %v624_v1, %v536_v33 }
  0xf4   : > { %v809_v50 = vadd.f32 %v793_v53, %v505_v13 }
  0xf5   : > { %v792_v24 = vmul.f32 %v776_v37, %v760_v39 }
  0xf6   : > { %1228 = vmatprep.subr.mxu0 %v809_v50 }
  0xf7   : > { %1229 = vmatpush3.msra.mxu0 %v809_v50  ;;  %v808_v28 = vadd.f32 %v792_v24, %v504_v43 }
  0xf9   : > { %1230 = vmatprep.subr.mxu0 %v808_v28 }
  0xfa   : > { %1231 = vmatpush3.msra.mxu0 %v808_v28 }
  0xfb   : > { %1233 = vmatmul.mubr.f32.vlgmr.msra.gmra.mxu0 %v825_v38 }
 0x1bb   : > { %v1234_v40 = vpop.f32.mrf.mxu0 }
 0x1bc   : > { %v904_v41 = vadd.f32 %v1234_v40, %v827_v7  ;;  %910 = sbr.rel (%p1174_p2) target bundleno = 500 (0x1f4), region = 72 }
 0x1bd   : > { %v894_v54 = vpop.f32.mrf.mxu0 }
 0x1be   : > { %906 = vst [vmem:[#allocation2 + $0x8] sm:$0xff] %v904_v41  ;;  %v903_v58 = vadd.f32 %v894_v54, %v826_v18 }
 0x1c0   : > { %905 = vst [vmem:[#allocation2] sm:$0xff] %v903_v58 }
 0x1c1   : > { %v912_v52 = vld [vmem:[%s493_s1] sm:$0x1]  ;;  %v934_v4 = vlaneseq }
 0x1c2   : > { %v914_v15 = vand.u32 2147483647, %v912_v52  ;;  %v913_v42 = vmax.f32 %v912_v52, 0.0  ;;  %v928_v46 = vld [vmem:[%s496_s2] sm:$0x1] }
 0x1c3   : > { %v935_v17 = vshrl.u32 %v934_v4, 7  ;;  %v911_v59 = vld [vmem:[%s490_s12] sm:$0x1] }
 0x1c4   : > { %v915_v49 = vsub.f32 0.0, %v914_v15 }
 0x1c5   : > { %v936_v47 = vsub.s32 0, %v935_v17  ;;  %v932_v29 = vld [vmem:[#allocation2 + $0x8] sm:$0xff] }
 0x1c6   : > { %v916_v21 = vmul.f32 1.442695, %v915_v49 }
 0x1c7   : > { %v931_v34 = vld [vmem:[#allocation2] sm:$0xff] }
 0x1c8   : > { %1447 = vpow2.f32 %v916_v21 }
 0x1d5   : > { %v1448_v55 = vpop.eup %1447 }
 0x1d6   : > { %v918_v0 = vadd.f32 1.0, %v1448_v55  ;;  %v921_v19 = vmul.f32 -0.5, %v1448_v55  ;;  %v924_v63 = vand.u32 2147483647, %v1448_v55 }
 0x1d8   : > { %1449 = vlog2.f32 %v918_v0  ;;  %v922_v62 = vadd.f32 1.0, %v921_v19  ;;  %vm925_vm0 = vcmp.lt.f32.partialorder %v924_v63, 0.0004427343 }
 0x1da   : > { %v923_v20 = vmul.f32 %v1448_v55, %v922_v62 }
 0x1e5   : > { %v1450_v56 = vpop.eup %1449 }
 0x1e6   : > { %v920_v45 = vmul.f32 0.6931472, %v1450_v56 }
 0x1e8   : > { %v926_v5 = vsel %vm925_vm0, %v923_v20, %v920_v45 }
 0x1e9   : > { %v927_v25 = vadd.f32 %v926_v5, %v913_v42 }
 0x1eb   : > { %v929_v14 = vmul.f32 %v928_v46, %v927_v25 }
 0x1ed   : > { %v930_v3 = vadd.f32 %v929_v14, %v911_v59 }
 0x1ef   : > { %v937_v60 = vrot.slane %v930_v3, %v936_v47 }
 0x1f1   : > { %v939_v51 = vadd.f32 %v937_v60, %v931_v34  ;;  %v940_v22 = vadd.f32 %v937_v60, %v932_v29 }
 0x1f3   : > { %941 = vst [vmem:[%s2061_s10] sm:$0xff] %v939_v51  ;;  %942 = vst [vmem:[%s2061_s10 + $0x8] sm:$0xff] %v940_v22 }
 0x1f4 PF: > { %s2511_s30 = sld [smem:[#allocation28_spill]]  ;;  %s1176_s6 = sshll.u32 %s1703_s11, 7 }
 0x1f5   : > { %s2512_s4 = sld [smem:[#allocation35_spill]]  ;;  %s959_s1 = sshll.u32 %s2061_s10, 4  ;;  %s2331_s1 = int_to_ptr.vmem [resolvable:$true] %s959_s1 }
 0x1f6   : > { %s2335_s17 = scalar_lea.sflag [#allocation5], %s481_s20  ;;  %s1563_s24 = scalar_lea.vmem %s2331_s1, 256 }
 0x1f7   : > { %p1564_p5 = scmp.ne.s32.totalorder %s2331_s1, %s1563_s24  ;;  %s1725_s11 = smov [#allocation11]  }
 0x1f8   : > { %s1567_s22 = sshll.u32 %s1725_s11, 4  ;;  %s1568_s22 = int_to_ptr.vmem [resolvable:$false] %s1567_s22 }
 0x1f9   : > { %s1569_s2 = scalar_lea.vmem %s1568_s22, 512  ;;  %p1570_p7 = scmp.lt.s32.totalorder %s2331_s1, %s1568_s22 }
 0x1fa   : > { %p2513_p11 = scmp.ne.s32.totalorder %s2511_s30, 0  ;;  %p1571_p1 = scmp.lt.s32.totalorder %s1569_s2, %s1563_s24 }
 0x1fb   : > { %s2328_s12 = scalar_lea.hbm %s2512_s4, %s1176_s6 }
 0x1fc   : > { %p1565_p3 = pnand %p1564_p5, %p2513_p11  ;;  %p1572_p8 = por %p1571_p1, %p1570_p7 }
 0x1fe   : > { %p1566_p4 = pneg %p1565_p3 }
 0x200   : > { %p1573_p13 = pnand %p1572_p8, %p1566_p4 }
 0x202   : > { %1576 = shalt.err (!%p1573_p13)
}
 0x203   : > { %s1577_s20 = scalar_lea.hbm %s2328_s12, 256  ;;  %s1581_s26 = scalar_lea.hbm %s2512_s4, 512 }
 0x204   : > { %p1578_p9 = scmp.ne.s32.totalorder %s2328_s12, %s1577_s20  ;;  %p1582_p0 = scmp.lt.s32.totalorder %s2328_s12, %s2512_s4 }
 0x205   : > { %p1583_p6 = scmp.lt.s32.totalorder %s1581_s26, %s1577_s20 }
 0x206   : > { %p1579_p12 = pnand %p1578_p9, %p2513_p11 }
 0x207   : > { %p1584_p2 = por %p1583_p6, %p1582_p0 }
 0x208   : > { %p1580_p10 = pneg %p1579_p12 }
 0x20a   : > { %p1585_p5 = pnand %p1584_p2, %p1580_p10 }
 0x20c   : > { %1588 = shalt.err (!%p1585_p5)
}
 0x20d   : > { %s1726_s15 = smov 128   ;;  %s1727_s21 = smov 256  }
 0x20e   : > { %s1728_s0 = smov 8  }
 0x20f   : > { %1243 = dma.vmem_to_hbm [thread:$0]  (%p2513_p11), %s2331_s1, 256, %s2328_s12, %s2335_s17, %s1726_s15, %s1727_s21, %s1728_s0  }
 0x210 PF: > { %s2514_s16 = sld [smem:[#allocation16_spill]]  ;;  %p1263_p3 = scmp.ge.s32.totalorder %s1715_s14, 2 }
 0x211   : > { %s2515_s19 = sld [smem:[#allocation26_spill]] }
 0x216   : > { %s974_s27 = sand.u32 1, %s2514_s16  }
 0x217   : > { %p2516_p4 = scmp.ne.s32.totalorder %s2515_s19, 0  ;;  %s975_s23 = scalar_lea.sflag [#allocation5], %s974_s27 }
 0x219   : > { %p1259_p7 = pnand %p1263_p3, %p2516_p4 }
 0x21b   : > { %p1260_p1 = pneg %p1259_p7 }
 0x21d   : > { %1658 = dma.done.wait (%p1260_p1), %s975_s23, 256  }
 0x21e   : > { %1660 = vsyncadd (%p1260_p1), %s975_s23, 4294967040  ;;  %s29_s14 = sadd.s32 1, %s1715_s14   ;;  %s2518_s30 = sld [smem:[#allocation17_spill]] }
 0x21f   : > { %p2363_p8 = scmp.ge.s32.totalorder %s29_s14, 6   ;;  %s2519_s26 = sld [smem:[#allocation24_spill]] }
 0x220   : > { %s2520_s18 = sld [smem:[#allocation25_spill]]  ;;  %s2527_s24 = smov %s1667_s25 }
 0x221   : > { %s2521_s13 = sld [smem:[#allocation18_spill]]  ;;  %s2529_s27 = smov %s1679_s28 }
 0x222   : > { %s2522_s9 = sld [smem:[#allocation27_spill]]  ;;  %s2530_s28 = smov %s1683_s29 }
 0x223   : > { %s2523_s10 = sld [smem:[#allocation20_spill]] }
 0x224   : > { %s2524_s11 = sld [smem:[#allocation21_spill]]  ;;  %s2528_s25 = smov %s2518_s30 }
 0x225   : > { %s2525_s12 = sld [smem:[#allocation22_spill]]  ;;  %s2532_s30 = smov %s1691_s8 }
 0x226   : > { %s2526_s1 = sld [smem:[#allocation23_spill]]  ;;  %s2531_s29 = smov %s2520_s18 }
 0x227   : > { %s2533_s8 = smov %s2521_s13 }
 0x228   :  { %28 = sbr.rel (!%p2363_p8) target bundleno = 22 (0x16), region = 147 }
 0x22c   : > { %s2534_s13 = smov %s2526_s1 }
 0x22d   :  { %980 = vsyncpa [#allocation4], 1 }
 0x22e   :  { %982 = vsyncpa [#allocation4 + $0x1], 1 }
 0x22f   :  { %983 = vsyncpa [#allocation7], 1 }
 0x230   :  { %985 = vsyncpa [#allocation7 + $0x1], 1 }
 0x231   :  { %986 = vsyncpa [#allocation10], 1 }
 0x232   :  { %988 = vsyncpa [#allocation10 + $0x1], 1 }
 0x233   :  { %989 = vsyncpa [#allocation5], 1 }
 0x234   :  { %991 = vsyncpa [#allocation5 + $0x1], 1 }

</bundles_post_ra>
